<compile_context>
chip_gen: v6e
topology: v6e:2x2x1
jax: 0.10.0
libtpu: 0.0.40
codegen_flags: <defaults>
</compile_context>

<pallas_src>
import functools

import jax
import jax.numpy as jnp
from jax.experimental import pallas as pl
from jax.experimental.pallas import tpu as pltpu


def _round_up(x, m):
    return ((x + m - 1) // m) * m


def _linear_kernel(x_ref, w_ref, o_ref):
    # x_ref: (tm, K)   VMEM   activation tile
    # w_ref: (K, tn)   VMEM   pre-transposed weight tile (class dim on lanes)
    # o_ref: (tm, tn)  VMEM   lane-dense output tile
    o_ref[...] = jnp.dot(
        x_ref[...], w_ref[...], preferred_element_type=jnp.float32
    ).astype(o_ref.dtype)


def prepare_classifier2_weight(weight, use_bf16=False):
    """One-time weight prep (call OUTSIDE the per-step jit, at param init).

    Transposes W (class_num, in_dim) -> (in_dim, C_pad) and zero-pads the
    class axis to a lane-friendly multiple (256 for heads wider than 128 so
    tn=256 matches the v6e/v7x MXU; 128 otherwise).
    """
    class_num, in_dim = weight.shape
    lane_mult = 128 if class_num <= 128 else 256
    c_pad = _round_up(class_num, lane_mult)
    w_t = jnp.asarray(weight).T
    if c_pad != class_num:
        w_t = jnp.pad(w_t, ((0, 0), (0, c_pad - class_num)))
    if use_bf16:
        w_t = w_t.astype(jnp.bfloat16)
    return w_t


def _choose_tiles(batch, c_pad, k, x_bytes, w_bytes, o_bytes, sublane):
    """Pick (tm, tn) first; the caller pads B up to a multiple of tm."""
    tm = min(128, _round_up(batch, sublane))
    tn = 256 if c_pad % 256 == 0 else 128

    def footprint(tm_, tn_):  # double-buffered resident-K footprint
        return 2 * (tm_ * k * x_bytes + k * tn_ * w_bytes + tm_ * tn_ * o_bytes)

    budget = 40 * 1024 * 1024  # conservative: fits v7x's 64 MiB physical VMEM
    while footprint(tm, tn) > budget and tn > 128 and c_pad % (tn // 2) == 0:
        tn //= 2
    while footprint(tm, tn) > budget and tm > sublane:
        tm = max(sublane, _round_up(tm // 2, sublane))
    # TODO(synk): for extremely wide in_dim (footprint still over budget), add
    # a K grid axis with an f32 VMEM accumulator instead of keeping K resident.
    return tm, tn


def classifier2_forward(x, w_t_padded, *, class_num, use_bf16=False,
                        force_pallas=False):
    """y = x2d @ W.T using a prepared weight from prepare_classifier2_weight."""
    in_dim, c_pad = w_t_padded.shape

    # torch .squeeze() on pooled (N, C, 1, 1) features -> (N, C); (1,C,1,1)->(C,)
    x2d = x.reshape(-1, in_dim)
    batch = x2d.shape[0]
    squeeze_out = batch == 1
    out_dtype = x2d.dtype
    if use_bf16:
        x2d = x2d.astype(jnp.bfloat16)

    # Tiny-head fast path: fixed custom-call + per-step overhead dwarfs the
    # matmul; XLA's fused dot is strictly faster there on every generation.
    if not force_pallas and 2 * batch * in_dim * class_num < (1 << 21):
        y = jnp.dot(x2d, w_t_padded,
                    preferred_element_type=jnp.float32).astype(out_dtype)
        y = y[:, :class_num]
        return y[0] if squeeze_out else y

    sublane = 16 if x2d.dtype == jnp.bfloat16 else 8
    x_bytes = x2d.dtype.itemsize
    w_bytes = w_t_padded.dtype.itemsize
    o_bytes = jnp.dtype(out_dtype).itemsize

    tm, tn = _choose_tiles(batch, c_pad, in_dim, x_bytes, w_bytes, o_bytes,
                           sublane)
    b_pad = _round_up(batch, tm)

    # Megacore (v7x has 2 TensorCores): guarantee >=2 blocks on a parallel
    # axis when the problem allows it.
    if (c_pad // tn) * (b_pad // tm) == 1:
        if tn > 128 and c_pad % (tn // 2) == 0:
            tn //= 2
        elif tm >= 2 * sublane and (tm // 2) % sublane == 0:
            tm //= 2

    if b_pad != batch:
        x2d = jnp.pad(x2d, ((0, b_pad - batch), (0, 0)))

    tile_bytes = 2 * (tm * in_dim * x_bytes + in_dim * tn * w_bytes
                      + tm * tn * o_bytes)
    vmem_limit = int(min(64 * 1024 * 1024,
                         max(2 * tile_bytes, 32 * 1024 * 1024)))

    cost = pl.CostEstimate(
        flops=2 * b_pad * in_dim * c_pad,
        transcendentals=0,
        bytes_accessed=(b_pad * in_dim * x_bytes
                        + in_dim * c_pad * w_bytes
                        + b_pad * c_pad * o_bytes),
    )

    out = pl.pallas_call(
        _linear_kernel,
        out_shape=jax.ShapeDtypeStruct((b_pad, c_pad), out_dtype),
        # Class axis OUTER, batch axis INNER: the weight block index (0, j) is
        # invariant across the inner axis, so W is streamed from HBM exactly
        # once; only the (small) activation tiles are re-fetched per class tile.
        grid=(c_pad // tn, b_pad // tm),
        in_specs=[
            pl.BlockSpec((tm, in_dim), lambda j, i: (i, 0)),   # x tile
            pl.BlockSpec((in_dim, tn), lambda j, i: (0, j)),   # W tile
        ],
        out_specs=pl.BlockSpec((tm, tn), lambda j, i: (i, j)),
        compiler_params=pltpu.CompilerParams(
            dimension_semantics=("parallel", "parallel"),
            vmem_limit_bytes=vmem_limit,
        ),
        cost_estimate=cost,
    )(x2d, w_t_padded)

    out = out[:batch, :class_num]
    if squeeze_out:
        out = out[0]
    return out


if __name__ == "__main__":
    key = jax.random.PRNGKey(0)
    kx1, kw1, kx2, kw2 = jax.random.split(key, 4)

    # --- Pallas path: small-but-real classifier-head shapes -----------------
    batch, in_dim, class_num = 16, 128, 384
    x = jax.random.normal(kx1, (batch, in_dim, 1, 1), dtype=jnp.float32)
    # weights_init_classifier: normal(std=0.001), no bias.
    w = 0.001 * jax.random.normal(kw1, (class_num, in_dim), dtype=jnp.float32)

    w_t = prepare_classifier2_weight(w)            # once, outside the jit
    fwd = jax.jit(functools.partial(classifier2_forward,
                                    class_num=class_num, force_pallas=True))
    y = fwd(x, w_t)
    jax.block_until_ready(y)

    y_ref = x.reshape(batch, in_dim) @ w.T
    assert y.shape == (batch, class_num)
    assert jnp.allclose(y, y_ref, atol=1e-5, rtol=1e-5)

    # --- Tiny-shape fast path (plain dot dispatch) ---------------------------
    b2, d2, c2 = 8, 32, 16
    x2 = jax.random.normal(kx2, (b2, d2, 1, 1), dtype=jnp.float32)
    w2 = 0.001 * jax.random.normal(kw2, (c2, d2), dtype=jnp.float32)
    w2_t = prepare_classifier2_weight(w2)
    fwd2 = jax.jit(functools.partial(classifier2_forward, class_num=c2))
    y2 = fwd2(x2, w2_t)
    jax.block_until_ready(y2)
    assert jnp.allclose(y2, x2.reshape(b2, d2) @ w2.T, atol=1e-5, rtol=1e-5)

    print("KERNEL_OK")
</pallas_src>

<mosaic_0001>
module attributes {stable_mosaic.version = 11 : i64} {
  func.func @_linear_kernel(%arg0: i32, %arg1: i32, %arg2: memref<16x128xf32, #tpu.memory_space<vmem>>, %arg3: memref<128x256xf32, #tpu.memory_space<vmem>>, %arg4: memref<16x256xf32, #tpu.memory_space<vmem>>) attributes {dimension_semantics = [#tpu.dimension_semantics<parallel>, #tpu.dimension_semantics<parallel>], iteration_bounds = array<i64: 2, 1>, scalar_prefetch = 0 : i64, scratch_operands = 0 : i64, tpu.core_type = #tpu.core_type<tc>, window_params = [{transform_indices = @transform_0, window_bounds = array<i64: 16, 128>}, {transform_indices = @transform_1, window_bounds = array<i64: 128, 256>}, {transform_indices = @transform_2, window_bounds = array<i64: 16, 256>}]} {
    %c0 = arith.constant 0 : index
    %c0_0 = arith.constant 0 : index
    %0 = vector.load %arg2[%c0, %c0_0] : memref<16x128xf32, #tpu.memory_space<vmem>>, vector<16x128xf32>
    %c0_1 = arith.constant 0 : index
    %c0_2 = arith.constant 0 : index
    %1 = vector.load %arg3[%c0_1, %c0_2] : memref<128x256xf32, #tpu.memory_space<vmem>>, vector<128x256xf32>
    %cst = arith.constant dense<0.000000e+00> : vector<16x256xf32>
    %2 = tpu.matmul %0, %1, %cst {dimension_numbers = #tpu.dot_dimension_numbers<[1], [0], [0], [1], [0, 0, 1, 1], [], []>} : vector<16x128xf32>, vector<128x256xf32>, vector<16x256xf32> -> vector<16x256xf32>
    %c0_3 = arith.constant 0 : index
    %c0_4 = arith.constant 0 : index
    %3 = vector.load %arg4[%c0_3, %c0_4] : memref<16x256xf32, #tpu.memory_space<vmem>>, vector<16x256xf32>
    tpu.vector_store %arg4[%c0_3, %c0_4], %2 {strides = array<i32>} : memref<16x256xf32, #tpu.memory_space<vmem>>, vector<16x256xf32>,
    return
  }
  func.func @transform_0(%arg0: i32, %arg1: i32) -> (i32, i32) {
    %c0_i32 = arith.constant 0 : i32
    %c0_i32_0 = arith.constant 0 : i32
    return %arg1, %c0_i32 : i32, i32
  }
  func.func @transform_1(%arg0: i32, %arg1: i32) -> (i32, i32) {
    %c0_i32 = arith.constant 0 : i32
    %c0_i32_0 = arith.constant 0 : i32
    return %c0_i32, %arg0 : i32, i32
  }
  func.func @transform_2(%arg0: i32, %arg1: i32) -> (i32, i32) {
    %c0_i32 = arith.constant 0 : i32
    return %arg1, %arg0 : i32, i32
  }
}

</mosaic_0001>

<bundles_post_ra>
// kernel: classifier2_forward.1
= control target key start
LH: loop header
LB: loop body
LE: loop exit
PB: predicated region body
PF: predicated region fallthrough
CT: control target
= control target key end

     0   :  { %7 = vsyncpa [#allocation3], 0  ;;  %s864_s0 = inlined_call_operand.hbm [shape: f32[16,128], index: 0, kind: input, shape index: {}]   ;;  %s865_s1 = inlined_call_operand.hbm [shape: f32[128,512], index: 1, kind: input, shape index: {}]   ;;  %s866_s2 = inlined_call_operand.vmem [shape: f32[16,512], index: 2, kind: output, shape index: {}]  }
   0x1   :  { %8 = vsyncpa [#allocation5], 0 }
   0x2   :  { %10 = vsyncpa [#allocation5 + $0x1], 0  ;;  %s693_s9 = smov 0   ;;  %s695_s10 = smov 0  }
   0x3   :  { %s697_s11 = smov 0   ;;  %s699_s12 = smov 0  }
   0x4   :  { %s701_s13 = smov 0   ;;  %s703_s14 = smov 0  }
   0x5 LB: > { %s437_s15 = sadd.s32 4294967295, %s668_s14   ;;  %p68_p0 = scmp.ne.s32.totalorder %s656_s11, %s652_s10  ;;  %s668_s14 = sphi %s703_s14, %s16_s14   ;;  %s664_s13 = sphi %s701_s13, %s884_s13   ;;  %s660_s12 = sphi %s699_s12, %s883_s12   ;;  %s656_s11 = sphi %s697_s11, %s882_s11   ;;  %s652_s10 = sphi %s695_s10, %s881_s10   ;;  %s648_s9 = sphi %s693_s9, %s880_s9  }
   0x6   : > { %p69_p1 = scmp.eq.s32.totalorder %s668_s14, 0  ;;  %p74_p2 = scmp.ne.s32.totalorder %s652_s10, %s648_s9 }
   0x7   : > { %p726_p3 = scmp.eq.s32.totalorder %s437_s15, 0  ;;  %p100_p4 = scmp.eq.s32.totalorder %s437_s15, 1 }
   0x8   : > { %p70_p5 = por %p69_p1, %p68_p0  ;;  %p439_p6 = scmp.ge.s32.totalorder %s668_s14, 1 }
   0x9   : > { %s870_s16 = scalar_select %p726_p3, 1, 0 }
   0xa   : > { %p733_p7 = por %p726_p3, %p74_p2  ;;  %p737_p8 = por %p100_p4, %p68_p0 }
   0xb   : > { %p113_p9 = scmp.lt.s32.totalorder %s668_s14, 3  ;;  %s670_s20 = smov [#allocation2]  }
   0xc   : > { %s871_s17 = scalar_select %p733_p7, 1, 0 }
   0xd   : > { %s872_s18 = scalar_select %p737_p8, 1, 0 }
   0xe   : > { %p742_p10 = pnand %p439_p6, %p113_p9  ;;  %s128_s21 = sshll.u32 %s670_s20, 4  ;;  %s129_s21 = int_to_ptr.vmem [resolvable:$true] %s128_s21 }
   0xf   : > { %p503_p12 = scmp.lt.s32.totalorder %s668_s14, 2  ;;  %s28_s24 = sadd.s32 1, %s664_s13 }
  0x10   : > { %p494_p11 = pneg %p742_p10  ;;  %p760_p1 = scmp.ge.s32.totalorder %s28_s24, 2 }
  0x11   : > { %p755_p0 = pnand %p503_p12, %p70_p5  ;;  %s571_s26 = scalar_lea.vmem %s129_s21, 256 }
  0x12   : > { %p751_p13 = pnand %p494_p11, %p726_p3  ;;  %p572_p4 = scmp.ne.s32.totalorder %s129_s21, %s571_s26 }
  0x13   : > { %p579_p11 = scmp.lt.s32.totalorder %s129_s21, %s129_s21  ;;  %p580_p8 = scmp.lt.s32.totalorder %s571_s26, %s571_s26 }
  0x14   : > { %p562_p2 = pneg %p751_p13 }
  0x15   : > { %p581_p7 = por %p580_p8, %p579_p11 }
  0x16   : > { %p574_p6 = pnand %p572_p4, %p562_p2 }
  0x18   : > { %p575_p9 = pneg %p574_p6 }
  0x1a   : > { %p582_p3 = pnand %p581_p7, %p575_p9 }
  0x1c   : > { %585 = shalt.err (!%p582_p3)
}
  0x1d   : > { %s671_s27 = smov 128   ;;  %s672_s28 = smov 8  }
  0x1e   : > { %497 = dma.hbm_to_vmem [thread:$0]  (!%p751_p13), %s864_s0, 256, %s129_s21, [#allocation3], %s671_s27, %s671_s27, %s672_s28  }
  0x1f   : > { %s61_s3 = sadd.s32 1, %s656_s11  ;;  %s886_s24 = smov (%p760_p1, %s28_s24), 0 }
  0x20   : > { %s142_s4 = sand.u32 1, %s656_s11   ;;  %s454_s5 = sshll.u32 %s664_s13, 8 }
  0x21   : > { %s58_s6 = ssub.s32 %s664_s13, %s886_s24  ;;  %s442_s7 = sshll.u32 %s142_s4, 8 }
  0x22   : > { %p59_p3 = scmp.eq.s32.totalorder %s58_s6, 0  ;;  %s152_s15 = scalar_lea.hbm %s865_s1, %s454_s5 }
  0x23   : > { %s146_s22 = scalar_lea.vmem [#allocation4], %s442_s7  ;;  %s143_s21 = scalar_lea.sflag [#allocation5], %s142_s4 }
  0x24   : > { %s784_s20 = scalar_select %p59_p3, %s656_s11, %s61_s3  }
  0x25   : > { %s153_s26 = sshll.u32 %s146_s22, 4  ;;  %p588_p5 = pneg %p755_p0  ;;  %s154_s26 = int_to_ptr.vmem [resolvable:$true] %s153_s26 }
  0x26   : > { %s599_s25 = scalar_lea.vmem %s154_s26, 4096  ;;  %s673_s27 = smov [#allocation4]  }
  0x27   : > { %p600_p7 = scmp.ne.s32.totalorder %s154_s26, %s599_s25  ;;  %s604_s28 = sshll.u32 %s673_s27, 4  ;;  %s605_s28 = int_to_ptr.vmem [resolvable:$false] %s604_s28 }
  0x28   : > { %s606_s29 = scalar_lea.vmem %s605_s28, 8192  ;;  %p607_p13 = scmp.lt.s32.totalorder %s154_s26, %s605_s28 }
  0x29   : > { %p602_p8 = pnand %p600_p7, %p588_p5  ;;  %p608_p1 = scmp.lt.s32.totalorder %s606_s29, %s599_s25 }
  0x2b   : > { %p603_p12 = pneg %p602_p8  ;;  %p609_p2 = por %p608_p1, %p607_p13 }
  0x2d   : > { %p610_p4 = pnand %p609_p2, %p603_p12 }
  0x2f   : > { %613 = shalt.err (!%p610_p4)
}
  0x30   : > { %s674_s30 = smov 512   ;;  %s675_s3 = smov 256  }
  0x31   : > { %s676_s5 = smov 16   ;;  %165 = sbr.rel (%p742_p10) target bundleno = 297 (0x129), region = 28 }
  0x32   : > { %501 = dma.hbm_to_vmem [thread:$0]  (!%p755_p0), %s152_s15, 4096, %s154_s26, %s143_s21, %s674_s30, %s675_s3, %s676_s5  }
  0x33   : > { %p877_p6 = scmp.ne.s32.totalorder (!%p742_p10), %s870_s16, 0 }
  0x36   : > { %639 = dma.done.wait (%p877_p6), [#allocation3], 256  }
  0x37   : > { %641 = vsyncadd (%p877_p6), [#allocation3], 4294967040  ;;  %s797_s4 = sand.u32 1, %s652_s10   ;;  %p878_p0 = scmp.ne.s32.totalorder %s871_s17, 0 }
  0x38   : > { %s447_s6 = sshll.u32 %s797_s4, 8  ;;  %s172_s7 = scalar_lea.sflag [#allocation5], %s797_s4 }
  0x39   : > { %s801_s8 = scalar_lea.vmem [#allocation4], %s447_s6 }
  0x3a   : > { %643 = dma.done.wait (%p878_p0), %s172_s7, 4096  }
  0x3b   : > { %645 = vsyncadd (%p878_p0), %s172_s7, 4294963200  ;;  %v677_v0 = vmov 0.0   ;;  %v232_v1 = vld [vmem:[%s801_s8 + $0xf8] sm:$0xff]  ;;  %v231_v2 = vld [vmem:[%s801_s8 + $0xf0] sm:$0xff]  ;;  %s448_s16 = sshll.u32 %s797_s4, 5  ;;  %p879_p10 = scmp.ne.s32.totalorder %s872_s18, 0 }
  0x3c   : > { %297 = vmatprep.mubr.f32.mxu0 %v677_v0  ;;  %303 = vmatprep.mubr.f32.mxu1 %v677_v0  ;;  %v230_v3 = vld [vmem:[%s801_s8 + $0xe8] sm:$0xff]  ;;  %v229_v4 = vld [vmem:[%s801_s8 + $0xe0] sm:$0xff]  ;;  %v228_v5 = vld [vmem:[%s801_s8 + $0xd8] sm:$0xff]  ;;  %s194_s17 = scalar_lea.vmem [#allocation6], %s448_s16  ;;  %s455_s19 = sshll.u32 (%p879_p10), %s660_s12, 4 }
  0x3d   : > { %233 = vmatprep.subr.mxu0 %v232_v1  ;;  %456 = vmatprep.subr.mxu1 %v232_v1  ;;  %v227_v6 = vld [vmem:[%s801_s8 + $0xd0] sm:$0xff]  ;;  %v226_v7 = vld [vmem:[%s801_s8 + $0xc8] sm:$0xff]  ;;  %v225_v8 = vld [vmem:[%s801_s8 + $0xc0] sm:$0xff]  ;;  %s326_s15 = scalar_lea.vmem (%p879_p10), %s866_s2, %s455_s19 }
  0x3e   : > { %234 = vmatpush1.msra.mxu0 %v231_v2  ;;  %472 = vmatpush1.msra.mxu1 %v231_v2  ;;  %v224_v9 = vld [vmem:[%s801_s8 + $0xb8] sm:$0xff]  ;;  %v223_v10 = vld [vmem:[%s801_s8 + $0xb0] sm:$0xff]  ;;  %v222_v11 = vld [vmem:[%s801_s8 + $0xa8] sm:$0xff] }
  0x3f   : > { %235 = vmatprep.subr.mxu0 %v230_v3  ;;  %457 = vmatprep.subr.mxu1 %v230_v3  ;;  %v221_v12 = vld [vmem:[%s801_s8 + $0xa0] sm:$0xff]  ;;  %v220_v13 = vld [vmem:[%s801_s8 + $0x98] sm:$0xff]  ;;  %v219_v14 = vld [vmem:[%s801_s8 + $0x90] sm:$0xff] }
  0x40   : > { %236 = vmatpush1.msra.mxu0 %v229_v4  ;;  %473 = vmatpush1.msra.mxu1 %v229_v4  ;;  %v218_v15 = vld [vmem:[%s801_s8 + $0x88] sm:$0xff]  ;;  %v217_v16 = vld [vmem:[%s801_s8 + $0x80] sm:$0xff]  ;;  %v216_v17 = vld [vmem:[%s801_s8 + $0x78] sm:$0xff] }
  0x41   : > { %237 = vmatprep.subr.mxu0 %v228_v5  ;;  %458 = vmatprep.subr.mxu1 %v228_v5  ;;  %v215_v18 = vld [vmem:[%s801_s8 + $0x70] sm:$0xff]  ;;  %v214_v19 = vld [vmem:[%s801_s8 + $0x68] sm:$0xff]  ;;  %v213_v20 = vld [vmem:[%s801_s8 + $0x60] sm:$0xff] }
  0x42   : > { %238 = vmatpush1.msra.mxu0 %v227_v6  ;;  %474 = vmatpush1.msra.mxu1 %v227_v6  ;;  %v212_v21 = vld [vmem:[%s801_s8 + $0x58] sm:$0xff]  ;;  %v211_v22 = vld [vmem:[%s801_s8 + $0x50] sm:$0xff]  ;;  %v210_v23 = vld [vmem:[%s801_s8 + $0x48] sm:$0xff] }
  0x43   : > { %239 = vmatprep.subr.mxu0 %v226_v7  ;;  %459 = vmatprep.subr.mxu1 %v226_v7  ;;  %v209_v24 = vld [vmem:[%s801_s8 + $0x40] sm:$0xff]  ;;  %v208_v25 = vld [vmem:[%s801_s8 + $0x38] sm:$0xff]  ;;  %v207_v26 = vld [vmem:[%s801_s8 + $0x30] sm:$0xff] }
  0x44   : > { %240 = vmatpush1.msra.mxu0 %v225_v8  ;;  %475 = vmatpush1.msra.mxu1 %v225_v8  ;;  %v206_v27 = vld [vmem:[%s801_s8 + $0x28] sm:$0xff]  ;;  %v205_v28 = vld [vmem:[%s801_s8 + $0x20] sm:$0xff]  ;;  %v204_v29 = vld [vmem:[%s801_s8 + $0x18] sm:$0xff] }
  0x45   : > { %241 = vmatprep.subr.mxu0 %v224_v9  ;;  %460 = vmatprep.subr.mxu1 %v224_v9  ;;  %v203_v30 = vld [vmem:[%s801_s8 + $0x10] sm:$0xff]  ;;  %v202_v31 = vld [vmem:[%s801_s8 + $0x8] sm:$0xff]  ;;  %v201_v32 = vld [vmem:[%s801_s8] sm:$0xff] }
  0x46   : > { %242 = vmatpush1.msra.mxu0 %v223_v10  ;;  %476 = vmatpush1.msra.mxu1 %v223_v10  ;;  %v199_v33 = vld [vmem:[#allocation2] sm:$0xff]  ;;  %v200_v34 = vld [vmem:[#allocation2 + $0x8] sm:$0xff] }
  0x47   : > { %243 = vmatprep.subr.mxu0 %v222_v11  ;;  %461 = vmatprep.subr.mxu1 %v222_v11 }
  0x48   : > { %244 = vmatpush1.msra.mxu0 %v221_v12  ;;  %477 = vmatpush1.msra.mxu1 %v221_v12 }
  0x49   : > { %245 = vmatprep.subr.mxu0 %v220_v13  ;;  %462 = vmatprep.subr.mxu1 %v220_v13 }
  0x4a   : > { %246 = vmatpush1.msra.mxu0 %v219_v14  ;;  %478 = vmatpush1.msra.mxu1 %v219_v14 }
  0x4b   : > { %247 = vmatprep.subr.mxu0 %v218_v15  ;;  %463 = vmatprep.subr.mxu1 %v218_v15 }
  0x4c   : > { %248 = vmatpush1.msra.mxu0 %v217_v16  ;;  %479 = vmatpush1.msra.mxu1 %v217_v16 }
  0x4d   : > { %249 = vmatprep.subr.mxu0 %v216_v17  ;;  %464 = vmatprep.subr.mxu1 %v216_v17 }
  0x4e   : > { %250 = vmatpush1.msra.mxu0 %v215_v18  ;;  %480 = vmatpush1.msra.mxu1 %v215_v18 }
  0x4f   : > { %251 = vmatprep.subr.mxu0 %v214_v19  ;;  %465 = vmatprep.subr.mxu1 %v214_v19 }
  0x50   : > { %252 = vmatpush1.msra.mxu0 %v213_v20  ;;  %481 = vmatpush1.msra.mxu1 %v213_v20 }
  0x51   : > { %253 = vmatprep.subr.mxu0 %v212_v21  ;;  %466 = vmatprep.subr.mxu1 %v212_v21 }
  0x52   : > { %254 = vmatpush1.msra.mxu0 %v211_v22  ;;  %482 = vmatpush1.msra.mxu1 %v211_v22 }
  0x53   : > { %255 = vmatprep.subr.mxu0 %v210_v23  ;;  %467 = vmatprep.subr.mxu1 %v210_v23 }
  0x54   : > { %256 = vmatpush1.msra.mxu0 %v209_v24  ;;  %483 = vmatpush1.msra.mxu1 %v209_v24 }
  0x55   : > { %257 = vmatprep.subr.mxu0 %v208_v25  ;;  %468 = vmatprep.subr.mxu1 %v208_v25 }
  0x56   : > { %258 = vmatpush1.msra.mxu0 %v207_v26  ;;  %484 = vmatpush1.msra.mxu1 %v207_v26 }
  0x57   : > { %259 = vmatprep.subr.mxu0 %v206_v27  ;;  %469 = vmatprep.subr.mxu1 %v206_v27 }
  0x58   : > { %260 = vmatpush1.msra.mxu0 %v205_v28  ;;  %485 = vmatpush1.msra.mxu1 %v205_v28 }
  0x59   : > { %261 = vmatprep.subr.mxu0 %v204_v29  ;;  %470 = vmatprep.subr.mxu1 %v204_v29 }
  0x5a   : > { %262 = vmatpush1.msra.mxu0 %v203_v30  ;;  %486 = vmatpush1.msra.mxu1 %v203_v30 }
  0x5b   : > { %263 = vmatprep.subr.mxu0 %v202_v31  ;;  %471 = vmatprep.subr.mxu1 %v202_v31 }
  0x5c   : > { %264 = vmatpush1.msra.mxu0 %v201_v32  ;;  %487 = vmatpush1.msra.mxu1 %v201_v32 }
  0x5d   : > { %298 = vmatmul.mubr.f32.vlgmr.msra.gmra.mxu0 %v199_v33  ;;  %304 = vmatmul.mubr.f32.vlgmr.msra.gmra.mxu1 %v200_v34 }
 0x11c   : > { %320 = sbr.rel (!%p879_p10) target bundleno = 297 (0x129), region = 40 }
 0x11d   : > { %v299_v35 = vpop.f32.mrf.mxu0  ;;  %v305_v36 = vpop.f32.mrf.mxu1 }
 0x11e   : > { %310 = vst [vmem:[%s194_s17] sm:$0xff] %v299_v35  ;;  %312 = vst [vmem:[%s194_s17 + $0x10] sm:$0xff] %v305_v36 }
 0x11f   : > { %v301_v37 = vpop.f32.mrf.mxu0  ;;  %v307_v38 = vpop.f32.mrf.mxu1 }
 0x120   : > { %311 = vst [vmem:[%s194_s17 + $0x8] sm:$0xff] %v301_v37  ;;  %313 = vst [vmem:[%s194_s17 + $0x18] sm:$0xff] %v307_v38 }
 0x125   : > { %v339_v39 = vld [vmem:[%s194_s17] sm:$0xff]  ;;  %v343_v41 = vld [vmem:[%s194_s17 + $0x10] sm:$0xff] }
 0x126   : > { %340 = vst [vmem:[%s326_s15] sm:$0xff] %v339_v39  ;;  %344 = vst [vmem:[%s326_s15 + $0x20] sm:$0xff] %v343_v41 }
 0x127   : > { %v341_v40 = vld [vmem:[%s194_s17 + $0x8] sm:$0xff]  ;;  %v345_v42 = vld [vmem:[%s194_s17 + $0x18] sm:$0xff] }
 0x128   : > { %342 = vst [vmem:[%s326_s15 + $0x8] sm:$0xff] %v341_v40  ;;  %346 = vst [vmem:[%s326_s15 + $0x28] sm:$0xff] %v345_v42 }
 0x129 PF: > { %s16_s14 = sadd.s32 1, %s668_s14   ;;  %s880_s9 = smov %s652_s10 }
 0x12a   : > { %p13_p9 = scmp.ge.s32.totalorder %s16_s14, 4   ;;  %s881_s10 = smov %s656_s11 }
 0x12b   : > { %s882_s11 = smov %s784_s20  ;;  %s883_s12 = smov %s664_s13 }
 0x12c   : > { %s884_s13 = smov %s886_s24  ;;  %15 = sbr.rel (!%p13_p9) target bundleno = 5 (0x5), region = 97 }
 0x131   :  { %362 = vsyncpa [#allocation3], 1 }
 0x132   :  { %364 = vsyncpa [#allocation3 + $0x1], 1 }
 0x133   :  { %365 = vsyncpa [#allocation5], 1 }
 0x134   :  { %367 = vsyncpa [#allocation5 + $0x1], 1 }

</bundles_post_ra>
